<compile_context>
chip_gen: v7x
topology: tpu7x:2x2x1
jax: 0.10.0
libtpu: 0.0.40
codegen_flags: <defaults>
</compile_context>

<pallas_src>
import functools

import jax
import jax.numpy as jnp
from jax.experimental import pallas as pl
from jax.experimental.pallas import tpu as pltpu


def _round_up(n, m):
    return ((n + m - 1) // m) * m


def soft_attn_kernel(x_ref, w1t_ref, w2t_ref, bwc_ref, o_ref, *, inv_l):
    """One grid step processes a (B_blk, Lp, Dp) batch slab of x.

    x_ref:   (B_blk, Lp, Dp) bf16   activations (halved HBM stream)
    w1t_ref: (Dp, Dp)        bf16   weight1.weight.T (resident across the grid)
    w2t_ref: (Dp, Dp)        bf16   weight2.weight.T (resident across the grid)
    bwc_ref: (2, Dp)         f32    row 0 = weight2.bias, row 1 = weight_c.weight
    o_ref:   (B_blk, Dp)     f32    lane/sublane-dense output tile
    """
    x = x_ref[...]                                          # (Bb, Lp, Dp) bf16
    b_blk, lp, dp = x.shape
    x_f32 = x.astype(jnp.float32)

    b2 = bwc_ref[0:1, :]                                    # (1, Dp) f32
    wc = bwc_ref[1:2, :]                                    # (1, Dp) f32

    # mean over the TRUE sequence length, f32 accumulation (padded L rows are 0)
    mean = jnp.sum(x_f32, axis=1) * inv_l                   # (Bb, Dp)

    # mean projection folded into a per-row bias: one (Bb, Dp) @ (Dp, Dp) MXU push
    bias_rows = jnp.dot(mean.astype(jnp.bfloat16), w1t_ref[...],
                        preferred_element_type=jnp.float32) + b2      # (Bb, Dp)

    # big x projection: one (Bb*Lp, Dp) @ (Dp, Dp) MXU matmul, f32 accumulation.
    # Lp is a multiple of 8 -> this reshape is a layout-free sublane merge.
    x_proj = jnp.dot(x.reshape(b_blk * lp, dp), w2t_ref[...],
                     preferred_element_type=jnp.float32)
    x_proj = x_proj.reshape(b_blk, lp, dp)

    # sigmoid(z) = 0.5*(tanh(0.5 z)+1): single EUP transcendental per element
    z = x_proj + bias_rows[:, None, :]                      # (Bb, Lp, Dp) f32
    s = 0.5 * (jnp.tanh(0.5 * z) + 1.0)

    # weight_c: D -> 1 lane reduction (f32). Padded D columns contribute 0
    # because wc is zero there.
    attn = jnp.sum(s * wc[:, None, :], axis=-1, keepdims=True)        # (Bb, Lp, 1)

    # attn^T @ x == sum_l attn[b,l] * x[b,l,:] (padded L rows have x == 0)
    out = jnp.sum(attn * x_f32, axis=1)                     # (Bb, Dp) f32
    o_ref[...] = out.astype(o_ref.dtype)


def _supports_buffered_weights():
    """Capability probe for pl.Buffered / pipeline_mode (construction-time)."""
    if not hasattr(pl, "Buffered"):
        return False
    try:
        pl.BlockSpec((8, 128), lambda i: (0, 0), pipeline_mode=pl.Buffered(1))
        return True
    except (TypeError, ValueError):
        return False


def _choose_b_blk(B, lp):
    """Pick b_blk (multiple of 8) so b_blk*lp ~= 256-512 rows, with >= 2 grid steps."""
    target_rows = 512
    b_blk = max(8, ((target_rows // max(lp, 1)) // 8) * 8)
    bp8 = _round_up(B, 8)
    if bp8 >= 16:
        half = max(8, ((bp8 // 2) // 8) * 8)
        b_blk = min(b_blk, half)        # keep both v7x TensorCores busy
    else:
        b_blk = 8
    return b_blk


def soft_attn_forward(x, w1, w2, b2, wc, *, b_blk=None):
    """x: (B, L, D) f32; w1, w2: (D, D) torch layout (out, in); b2: (D,); wc: (1, D)."""
    B, L, D = x.shape

    dp = _round_up(D, 128)          # lane alignment
    lp = _round_up(L, 8)            # sublane alignment -> layout-free in-kernel reshape
    if b_blk is None:
        b_blk = _choose_b_blk(B, lp)
    assert b_blk % 8 == 0, "b_blk must be a multiple of 8 (sublane alignment)"
    bp = _round_up(B, b_blk)

    # ---- host-side zero padding (mathematically inert: padded D columns hit a
    # zero wc, padded L rows multiply zero x, padded B rows are sliced off).
    x_p = jnp.pad(x, ((0, bp - B), (0, lp - L), (0, dp - D)))
    w1_p = jnp.pad(w1, ((0, dp - D), (0, dp - D)))
    w2_p = jnp.pad(w2, ((0, dp - D), (0, dp - D)))
    b2_p = jnp.pad(b2, ((0, dp - D),))
    wc_p = jnp.pad(wc, ((0, 0), (0, dp - D)))

    # bf16 activations + weights for the MXU / HBM stream; bias + attention
    # vector packed into one tiny f32 operand.
    x_bf = x_p.astype(jnp.bfloat16)
    w1t = w1_p.T.astype(jnp.bfloat16)
    w2t = w2_p.T.astype(jnp.bfloat16)
    bwc = jnp.stack([b2_p, wc_p[0]], axis=0).astype(jnp.float32)       # (2, dp)

    single_buffer = _supports_buffered_weights()
    if single_buffer:
        def w_spec(shape):
            return pl.BlockSpec(shape, lambda b: (0,) * len(shape),
                                pipeline_mode=pl.Buffered(1))
    else:
        def w_spec(shape):
            return pl.BlockSpec(shape, lambda b: (0,) * len(shape))

    # ---- explicit per-step VMEM budget (+headroom) so the larger x block is
    # not rejected by the default scoped VMEM limit (16 MiB v5e / 32 MiB v6e,v7x).
    w_bufs = 1 if single_buffer else 2
    x_blk_bytes = b_blk * lp * dp * 2            # bf16 x block (double-buffered)
    w_bytes = 2 * dp * dp * 2                    # w1t + w2t, bf16
    out_bytes = b_blk * dp * 4                   # f32 output tile (double-buffered)
    f32_tmp = 4 * b_blk * lp * dp * 4            # x_f32, x_proj, s, attn*x (conservative)
    budget = 2 * x_blk_bytes + 2 * out_bytes + w_bufs * w_bytes + f32_tmp + 2 * dp * 4
    vmem_limit = min(max(int(budget * 1.25) + (8 << 20), 32 << 20), 100 << 20)

    # TODO(synk): when resident bf16 weights (w_bufs * 4*dp^2 bytes) exceed ~24 MiB
    # (dp >= ~2.5k single-buffered), tile the D contraction over an extra
    # "arbitrary" grid axis (accumulate x_proj in VMEM scratch) or stream weight
    # panels with manual DMA — required to fit v7x's 64 MiB VMEM at D >= ~2-4k.

    kernel = functools.partial(soft_attn_kernel, inv_l=1.0 / float(L))

    out = pl.pallas_call(
        kernel,
        out_shape=jax.ShapeDtypeStruct((bp, dp), jnp.float32),
        grid=(bp // b_blk,),
        in_specs=[
            pl.BlockSpec((b_blk, lp, dp), lambda b: (b, 0, 0)),   # x batch slab
            w_spec((dp, dp)),                                     # w1^T (resident)
            w_spec((dp, dp)),                                     # w2^T (resident)
            w_spec((2, dp)),                                      # [b2; wc]
        ],
        out_specs=pl.BlockSpec((b_blk, dp), lambda b: (b, 0)),    # dense output tile
        compiler_params=pltpu.CompilerParams(
            dimension_semantics=("parallel",),                    # megacore / 2-TC split
            vmem_limit_bytes=vmem_limit),
    )(x_bf, w1t, w2t, bwc)

    return out[:B, :D]


def soft_attn_reference(x, w1, w2, b2, wc):
    """Pure-JAX (f32) re-implementation of the torch forward, for verification."""
    mean_embed = jnp.mean(x, axis=1, keepdims=True)                   # (B, 1, D)
    attn = mean_embed @ w1.T + (x @ w2.T + b2)                        # (B, L, D)
    attn = jax.nn.sigmoid(attn)
    attn = attn @ wc.T                                                # (B, L, 1)
    out = jnp.matmul(jnp.transpose(attn, (0, 2, 1)), x)[:, 0, :]      # (B, D)
    return out


if __name__ == "__main__":
    # Small, deliberately non-aligned shapes: exercises B padding (12 -> 16,
    # grid of 2 steps -> both TCs), D padding (32 -> 128 lanes), and the
    # auto-selected b_blk path.
    B, L, D = 12, 8, 32
    key = jax.random.PRNGKey(0)
    kx, k1, k2, kb, kc = jax.random.split(key, 5)

    x = jax.random.normal(kx, (B, L, D), dtype=jnp.float32)
    # Deterministic parameter init (same shapes as the nn.Linear layers).
    w1 = jax.random.normal(k1, (D, D), dtype=jnp.float32) * 0.1   # weight1.weight
    w2 = jax.random.normal(k2, (D, D), dtype=jnp.float32) * 0.1   # weight2.weight
    b2 = jax.random.normal(kb, (D,), dtype=jnp.float32) * 0.1     # weight2.bias
    wc = jax.random.normal(kc, (1, D), dtype=jnp.float32) * 0.1   # weight_c.weight

    out = soft_attn_forward(x, w1, w2, b2, wc)
    out = jax.block_until_ready(out)

    ref = soft_attn_reference(x, w1, w2, b2, wc)
    assert out.shape == (B, D)
    # bf16 activations/weights on the MXU with f32 accumulation -> relaxed tol.
    assert jnp.allclose(out, ref, rtol=2e-2, atol=2e-2), "mismatch vs reference"

    print("KERNEL_OK")
</pallas_src>

<mosaic_0001>
module attributes {stable_mosaic.version = 11 : i64} {
  func.func @soft_attn_kernel(%arg0: i32, %arg1: memref<8x8x128xbf16, #tpu.memory_space<vmem>>, %arg2: memref<128x128xbf16, #tpu.memory_space<vmem>>, %arg3: memref<128x128xbf16, #tpu.memory_space<vmem>>, %arg4: memref<2x128xf32, #tpu.memory_space<vmem>>, %arg5: memref<8x128xf32, #tpu.memory_space<vmem>>) attributes {dimension_semantics = [#tpu.dimension_semantics<parallel>], iteration_bounds = array<i64: 2>, scalar_prefetch = 0 : i64, scratch_operands = 0 : i64, tpu.core_type = #tpu.core_type<tc>, window_params = [{transform_indices = @transform_0, window_bounds = array<i64: 8, 8, 128>}, {pipeline_mode = #tpu.pipeline_mode<synchronous>, transform_indices = @transform_1, window_bounds = array<i64: 128, 128>}, {pipeline_mode = #tpu.pipeline_mode<synchronous>, transform_indices = @transform_2, window_bounds = array<i64: 128, 128>}, {pipeline_mode = #tpu.pipeline_mode<synchronous>, transform_indices = @transform_3, window_bounds = array<i64: 2, 128>}, {transform_indices = @transform_4, window_bounds = array<i64: 8, 128>}]} {
    %c0 = arith.constant 0 : index
    %c0_0 = arith.constant 0 : index
    %c0_1 = arith.constant 0 : index
    %0 = vector.load %arg1[%c0, %c0_0, %c0_1] : memref<8x8x128xbf16, #tpu.memory_space<vmem>>, vector<8x8x128xbf16>
    %1 = arith.extf %0 : vector<8x8x128xbf16> to vector<8x8x128xf32>
    %c0_2 = arith.constant 0 : index
    %c0_3 = arith.constant 0 : index
    %2 = vector.load %arg4[%c0_2, %c0_3] : memref<2x128xf32, #tpu.memory_space<vmem>>, vector<1x128xf32>
    %c1 = arith.constant 1 : index
    %c0_4 = arith.constant 0 : index
    %3 = vector.load %arg4[%c1, %c0_4] : memref<2x128xf32, #tpu.memory_space<vmem>>, vector<1x128xf32>
    %cst = arith.constant dense<0.000000e+00> : vector<8x128xf32>
    %4 = vector.multi_reduction <add>, %1, %cst [1] : vector<8x8x128xf32> to vector<8x128xf32>
    %cst_5 = arith.constant 1.250000e-01 : f32
    %5 = vector.broadcast %cst_5 : f32 to vector<8x128xf32>
    %6 = arith.mulf %4, %5 : vector<8x128xf32>
    %7 = arith.truncf %6 : vector<8x128xf32> to vector<8x128xbf16>
    %c0_6 = arith.constant 0 : index
    %c0_7 = arith.constant 0 : index
    %8 = vector.load %arg2[%c0_6, %c0_7] : memref<128x128xbf16, #tpu.memory_space<vmem>>, vector<128x128xbf16>
    %cst_8 = arith.constant dense<0.000000e+00> : vector<8x128xf32>
    %9 = tpu.matmul %7, %8, %cst_8 {dimension_numbers = #tpu.dot_dimension_numbers<[1], [0], [0], [1], [0, 0, 1, 1], [], []>} : vector<8x128xbf16>, vector<128x128xbf16>, vector<8x128xf32> -> vector<8x128xf32>
    %10 = vector.broadcast %2 : vector<1x128xf32> to vector<8x128xf32>
    %11 = arith.addf %9, %10 : vector<8x128xf32>
    %12 = vector.shape_cast %0 : vector<8x8x128xbf16> to vector<64x128xbf16>
    %c0_9 = arith.constant 0 : index
    %c0_10 = arith.constant 0 : index
    %13 = vector.load %arg3[%c0_9, %c0_10] : memref<128x128xbf16, #tpu.memory_space<vmem>>, vector<128x128xbf16>
    %cst_11 = arith.constant dense<0.000000e+00> : vector<64x128xf32>
    %14 = tpu.matmul %12, %13, %cst_11 {dimension_numbers = #tpu.dot_dimension_numbers<[1], [0], [0], [1], [0, 0, 1, 1], [], []>} : vector<64x128xbf16>, vector<128x128xbf16>, vector<64x128xf32> -> vector<64x128xf32>
    %15 = vector.shape_cast %14 : vector<64x128xf32> to vector<8x8x128xf32>
    %16 = vector.shape_cast %11 : vector<8x128xf32> to vector<8x1x128xf32>
    %17 = vector.broadcast %16 : vector<8x1x128xf32> to vector<8x8x128xf32>
    %18 = arith.addf %15, %17 : vector<8x8x128xf32>
    %cst_12 = arith.constant 5.000000e-01 : f32
    %19 = vector.broadcast %cst_12 : f32 to vector<8x8x128xf32>
    %20 = arith.mulf %19, %18 : vector<8x8x128xf32>
    %21 = math.tanh %20 : vector<8x8x128xf32>
    %cst_13 = arith.constant 1.000000e+00 : f32
    %22 = vector.broadcast %cst_13 : f32 to vector<8x8x128xf32>
    %23 = arith.addf %21, %22 : vector<8x8x128xf32>
    %cst_14 = arith.constant 5.000000e-01 : f32
    %24 = vector.broadcast %cst_14 : f32 to vector<8x8x128xf32>
    %25 = arith.mulf %24, %23 : vector<8x8x128xf32>
    %26 = vector.shape_cast %3 : vector<1x128xf32> to vector<1x1x128xf32>
    %27 = vector.broadcast %26 : vector<1x1x128xf32> to vector<8x8x128xf32>
    %28 = arith.mulf %25, %27 : vector<8x8x128xf32>
    %cst_15 = arith.constant dense<0.000000e+00> : vector<8x8xf32>
    %29 = vector.multi_reduction <add>, %28, %cst_15 [2] : vector<8x8x128xf32> to vector<8x8xf32>
    %30 = vector.shape_cast %29 : vector<8x8xf32> to vector<8x8x1xf32>
    %31 = vector.broadcast %30 : vector<8x8x1xf32> to vector<8x8x128xf32>
    %32 = arith.mulf %31, %1 : vector<8x8x128xf32>
    %cst_16 = arith.constant dense<0.000000e+00> : vector<8x128xf32>
    %33 = vector.multi_reduction <add>, %32, %cst_16 [1] : vector<8x8x128xf32> to vector<8x128xf32>
    %c0_17 = arith.constant 0 : index
    %c0_18 = arith.constant 0 : index
    %34 = vector.load %arg5[%c0_17, %c0_18] : memref<8x128xf32, #tpu.memory_space<vmem>>, vector<8x128xf32>
    tpu.vector_store %arg5[%c0_17, %c0_18], %33 {strides = array<i32>} : memref<8x128xf32, #tpu.memory_space<vmem>>, vector<8x128xf32>,
    return
  }
  func.func @transform_0(%arg0: i32) -> (i32, i32, i32) {
    %c0_i32 = arith.constant 0 : i32
    %c0_i32_0 = arith.constant 0 : i32
    %c0_i32_1 = arith.constant 0 : i32
    return %arg0, %c0_i32, %c0_i32_0 : i32, i32, i32
  }
  func.func @transform_1(%arg0: i32) -> (i32, i32) {
    %c0_i32 = arith.constant 0 : i32
    %c0_i32_0 = arith.constant 0 : i32
    %c0_i32_1 = arith.constant 0 : i32
    return %c0_i32, %c0_i32_0 : i32, i32
  }
  func.func @transform_2(%arg0: i32) -> (i32, i32) {
    %c0_i32 = arith.constant 0 : i32
    %c0_i32_0 = arith.constant 0 : i32
    %c0_i32_1 = arith.constant 0 : i32
    return %c0_i32, %c0_i32_0 : i32, i32
  }
  func.func @transform_3(%arg0: i32) -> (i32, i32) {
    %c0_i32 = arith.constant 0 : i32
    %c0_i32_0 = arith.constant 0 : i32
    %c0_i32_1 = arith.constant 0 : i32
    return %c0_i32, %c0_i32_0 : i32, i32
  }
  func.func @transform_4(%arg0: i32) -> (i32, i32) {
    %c0_i32 = arith.constant 0 : i32
    %c0_i32_0 = arith.constant 0 : i32
    return %arg0, %c0_i32 : i32, i32
  }
}

</mosaic_0001>

<bundles_post_ra>
// kernel: tpu_custom_call.1
= control target key start
LH: loop header
LB: loop body
LE: loop exit
PB: predicated region body
PF: predicated region fallthrough
CT: control target
= control target key end

     0   :  { %9 = vsyncpa [#allocation3], 0  ;;  %s1702_s0 = inlined_call_operand.hbm [shape: bf16[16,8,128], index: 0, kind: input, shape index: {}]   ;;  %s1703_s1 = inlined_call_operand.hbm [shape: bf16[128,128], index: 1, kind: input, shape index: {}]   ;;  %s1704_s2 = inlined_call_operand.hbm [shape: bf16[128,128], index: 2, kind: input, shape index: {}]   ;;  %s1705_s3 = inlined_call_operand.vmem [shape: f32[2,128], index: 3, kind: input, shape index: {}]   ;;  %s1706_s4 = inlined_call_operand.hbm [shape: f32[16,128], index: 4, kind: output, shape index: {}]  }
   0x1   :  { %11 = vsyncpa [#allocation3 + $0x1], 0 }
   0x2   :  { %12 = vsyncpa [#allocation6], 0 }
   0x3   :  { %13 = vsyncpa [#allocation4], 0 }
   0x4   :  { %15 = vsyncpa [#allocation4 + $0x1], 0  ;;  %s1365_s15 = smov 0   ;;  %s1367_s16 = smov 0  }
   0x5   :  { %s1369_s17 = smov 0   ;;  %s1371_s18 = smov 0  }
   0x6 LB: > { %s1386_s19 = sadd.s32 4294967295, %s1329_s18   ;;  %s956_s20 = sadd.s32 4294967294, %s1329_s18   ;;  %s1329_s18 = sphi %s1371_s18, %s1726_s18   ;;  %s1325_s17 = sphi %s1369_s17, %s1725_s17   ;;  %s1321_s16 = sphi %s1367_s16, %s1724_s16   ;;  %s1317_s15 = sphi %s1365_s15, %s1723_s15  }
   0x7   : > { %p41_p0 = scmp.ne.s32.totalorder %s1321_s16, %s1317_s15  ;;  %p1707_p1 = scmp.eq.s32.totalorder %s1386_s19, 0 }
   0x8   : > { %p134_p3 = scmp.eq.s32.totalorder %s956_s20, 1  ;;  %p957_p5 = scmp.ge.s32.totalorder %s1329_s18, 1 }
   0x9   : > { %p1395_p4 = por %p1707_p1, %p41_p0  ;;  %p141_p7 = scmp.lt.s32.totalorder %s1329_s18, 3 }
   0xa   : > { %p1400_p6 = por %p134_p3, %p41_p0  ;;  %s1331_s24 = smov [#allocation5]  }
   0xb   : > { %s1710_s21 = scalar_select %p1395_p4, 1, 0 }
   0xc   : > { %s1711_s22 = scalar_select %p1400_p6, 1, 0 }
   0xd   : > { %p1405_p8 = pnand %p957_p5, %p141_p7  ;;  %s153_s25 = sshll.u32 %s1331_s24, 4  ;;  %s1409_s25 = int_to_ptr.vmem [resolvable:$true] %s153_s25 }
   0xe   : > { %s1332_s27 = smov [#allocation7]   ;;  %s1173_s5 = scalar_lea.hbm %s1703_s1, 1024 }
   0xf   : > { %p1073_p9 = pneg %p1405_p8  ;;  %s166_s28 = sshll.u32 %s1332_s27, 4  ;;  %s1420_s28 = int_to_ptr.vmem [resolvable:$true] %s166_s28 }
  0x10   : > { %p1174_p12 = scmp.ne.s32.totalorder %s1703_s1, %s1173_s5  ;;  %p1180_p5 = scmp.lt.u32.totalorder %s1173_s5, %s1703_s1 }
  0x11   : > { %p1416_p11 = pnand %p1073_p9, %p1707_p1 }
  0x13   : > { %p1175_p13 = pneg %p1416_p11 }
  0x15   : > { %p1176_p0 = pnand %p1175_p13, %p1174_p12 }
  0x17   : > { %p1177_p3 = pneg %p1176_p0 }
  0x19   : > { %p1182_p7 = pnand %p1180_p5, %p1177_p3 }
  0x1b   : > { %1185 = shalt.err (!%p1182_p7)
}
  0x1c   : > { %s1186_s10 = scalar_lea.vmem %s1409_s25, 1024  ;;  %p1194_p2 = scmp.lt.s32.totalorder %s1409_s25, %s1409_s25 }
  0x1d   : > { %p1187_p9 = scmp.ne.s32.totalorder %s1409_s25, %s1186_s10  ;;  %p1195_p12 = scmp.lt.s32.totalorder %s1186_s10, %s1186_s10 }
  0x1f   : > { %p1189_p10 = pnand %p1187_p9, %p1175_p13  ;;  %p1196_p0 = por %p1195_p12, %p1194_p2 }
  0x21   : > { %p1190_p1 = pneg %p1189_p10 }
  0x23   : > { %p1197_p6 = pnand %p1196_p0, %p1190_p1 }
  0x25   : > { %1200 = shalt.err (!%p1197_p6)
}
  0x26   : > { %s1333_s11 = smov 64   ;;  %s1334_s12 = smov 4  }
  0x27   : > { %1076 = dma.hbm_to_vmem [thread:$0]  (!%p1416_p11), %s1703_s1, 1024, %s1409_s25, [#allocation6], %s1333_s11, %s1333_s11, %s1334_s12  }
  0x28   : > { %s1201_s27 = scalar_lea.hbm %s1704_s2, 1024 }
  0x29   : > { %p1202_p1 = scmp.ne.s32.totalorder %s1704_s2, %s1201_s27  ;;  %p1208_p10 = scmp.lt.u32.totalorder %s1201_s27, %s1704_s2 }
  0x2b   : > { %p1204_p2 = pnand %p1202_p1, %p1175_p13 }
  0x2d   : > { %p1205_p6 = pneg %p1204_p2 }
  0x2f   : > { %p1210_p3 = pnand %p1208_p10, %p1205_p6 }
  0x31   : > { %1213 = shalt.err (!%p1210_p3)
}
  0x32   : > { %s1214_s25 = scalar_lea.vmem %s1420_s28, 1024  ;;  %p1222_p12 = scmp.lt.s32.totalorder %s1420_s28, %s1420_s28 }
  0x33   : > { %p1215_p5 = scmp.ne.s32.totalorder %s1420_s28, %s1214_s25  ;;  %p1223_p0 = scmp.lt.s32.totalorder %s1214_s25, %s1214_s25 }
  0x35   : > { %p1217_p7 = pnand %p1215_p5, %p1175_p13  ;;  %p1224_p1 = por %p1223_p0, %p1222_p12 }
  0x37   : > { %p1218_p9 = pneg %p1217_p7 }
  0x39   : > { %p1225_p2 = pnand %p1224_p1, %p1218_p9 }
  0x3b   : > { %1228 = shalt.err (!%p1225_p2)
}
  0x3c   : > { %1079 = dma.hbm_to_vmem [thread:$0]  (!%p1416_p11), %s1704_s2, 1024, %s1420_s28, [#allocation6], %s1333_s11, %s1333_s11, %s1334_s12  }
  0x3d   : > { %s1481_s26 = sadd.s32 1, %s1329_s18   ;;  %s28_s9 = sadd.s32 1, %s1325_s17 }
  0x3e   : > { %s25_s10 = ssub.s32 %s1329_s18, %s1481_s26  ;;  %p35_p13 = scmp.ne.s32.totalorder %s1325_s17, %s1321_s16 }
  0x3f   : > { %p26_p6 = scmp.eq.s32.totalorder %s25_s10, 0  ;;  %p36_p10 = scmp.eq.s32.totalorder %s1329_s18, 0 }
  0x40   : > { %p1714_p3 = scmp.eq.s32.totalorder %s1386_s19, 1  ;;  %p1090_p7 = scmp.lt.s32.totalorder %s1329_s18, 2 }
  0x41   : > { %s1497_s14 = scalar_select %p26_p6, %s1325_s17, %s28_s9  }
  0x42   : > { %p1491_p5 = por %p1714_p3, %p35_p13  ;;  %p37_p9 = por %p36_p10, %p35_p13 }
  0x43   : > { %s183_s20 = sand.u32 1, %s1325_s17   ;;  %s995_s28 = sshll.u32 %s1329_s18, 9 }
  0x44   : > { %s1715_s13 = scalar_select %p1491_p5, 1, 0 }
  0x45   : > { %s961_s24 = sshll.u32 %s183_s20, 5  ;;  %s1504_s30 = scalar_lea.hbm %s1702_s0, %s995_s28 }
  0x46   : > { %s187_s5 = scalar_lea.vmem [#allocation2], %s961_s24  ;;  %p1508_p11 = pnand %p1090_p7, %p37_p9 }
  0x47   : > { %s194_s6 = sshll.u32 %s187_s5, 4  ;;  %s1512_s7 = scalar_lea.sflag [#allocation3], %s183_s20  ;;  %s1506_s6 = int_to_ptr.vmem [resolvable:$true] %s194_s6 }
  0x48   : > { %s1229_s8 = scalar_lea.hbm %s1504_s30, 512  ;;  %p1231_p0 = pneg %p1508_p11 }
  0x49   : > { %p1230_p12 = scmp.ne.s32.totalorder %s1504_s30, %s1229_s8  ;;  %s1234_s24 = scalar_lea.hbm %s1702_s0, 1024 }
  0x4a   : > { %p1235_p13 = scmp.lt.u32.totalorder %s1504_s30, %s1702_s0  ;;  %p1236_p6 = scmp.lt.u32.totalorder %s1234_s24, %s1229_s8 }
  0x4b   : > { %p1232_p1 = pnand %p1231_p0, %p1230_p12  ;;  %p1238_p3 = scmp.lt.u32.totalorder %s1229_s8, %s1504_s30 }
  0x4c   : > { %p1237_p10 = por %p1236_p6, %p1235_p13 }
  0x4d   : > { %p1233_p2 = pneg %p1232_p1 }
  0x4e   : > { %p1239_p7 = por %p1238_p3, %p1237_p10 }
  0x50   : > { %p1240_p9 = pnand %p1239_p7, %p1233_p2 }
  0x52   : > { %1243 = shalt.err (!%p1240_p9)
}
  0x53   : > { %s1244_s20 = scalar_lea.vmem %s1506_s6, 512  ;;  %s1335_s29 = smov [#allocation2]  }
  0x54   : > { %p1245_p12 = scmp.ne.s32.totalorder %s1506_s6, %s1244_s20  ;;  %s1249_s5 = sshll.u32 %s1335_s29, 4  ;;  %s1250_s5 = int_to_ptr.vmem [resolvable:$false] %s1249_s5 }
  0x55   : > { %s1251_s9 = scalar_lea.vmem %s1250_s5, 1024  ;;  %p1252_p4 = scmp.lt.s32.totalorder %s1506_s6, %s1250_s5 }
  0x56   : > { %p1247_p1 = pnand %p1245_p12, %p1231_p0  ;;  %p1253_p13 = scmp.lt.s32.totalorder %s1251_s9, %s1244_s20 }
  0x58   : > { %p1248_p5 = pneg %p1247_p1  ;;  %p1254_p6 = por %p1253_p13, %p1252_p4 }
  0x5a   : > { %p1255_p10 = pnand %p1254_p6, %p1248_p5 }
  0x5c   : > { %1258 = shalt.err (!%p1255_p10)
}
  0x5d   : > { %1083 = dma.hbm_to_vmem [thread:$0]  (!%p1508_p11), %s1504_s30, 512, %s1506_s6, %s1512_s7, %s1333_s11, %s1333_s11, %s1334_s12  }
  0x5e   : > { %206 = sbr.rel (%p1405_p8) target bundleno = 571 (0x23b), region = 36  ;;  %s1546_s8 = sand.u32 (!%p1405_p8), 1, %s1321_s16  }
  0x5f   : > { %s965_s10 = sshll.u32 (!%p1405_p8), %s1546_s8, 5  ;;  %s209_s24 = scalar_lea.sflag (!%p1405_p8), [#allocation3], %s1546_s8 }
  0x60   : > { %s1550_s28 = scalar_lea.vmem (!%p1405_p8), [#allocation2], %s965_s10  ;;  %p1717_p4 = scmp.ne.s32.totalorder (!%p1405_p8), %s1710_s21, 0 }
  0x65   : > { %1304 = dma.done.wait (%p1717_p4), %s209_s24, 512  }
  0x66   : > { %1306 = vsyncadd (%p1717_p4), %s209_s24, 4294966784  ;;  %p1718_p5 = scmp.eq.s32.totalorder %s1386_s19, 0 }
  0x68   : > { %1308 = dma.done.wait (%p1718_p5), [#allocation6], 2048   ;;  %p1719_p8 = pmov %p1718_p5 }
  0x69   : > { %v1336_v0 = vmov 0.0   ;;  %vm1337_vm0 = vmmov 0   ;;  %v1133_v1 = vld [vmem:[#allocation5] sm:$0xff]   ;;  %v1135_v3 = vld [vmem:[#allocation5 + $0x8] sm:$0xff]   ;;  %v1138_v5 = vld [vmem:[#allocation7 + $0x10] sm:$0xff]   ;;  %vm365_vm1 = vcmask 1041409  }
  0x6a   : > { %1310 = vsyncadd (%p1719_p8), [#allocation6], 4294965248  ;;  %1017 = vmatprep.subr.bf16.mxu0 %v1336_v0  ;;  %1033 = vmatprep.mubr.msk.bf16.mxu0 %vm1337_vm0, %v1336_v0  ;;  %v1134_v2 = vld [vmem:[#allocation7] sm:$0xff]   ;;  %v1136_v4 = vld [vmem:[#allocation7 + $0x8] sm:$0xff]   ;;  %vm367_vm2 = vcmask 1042434   ;;  %vm369_vm3 = vcmask 1043459  }
  0x6b   : > { %1018 = vmatpush3.bf16.msra.mxu0 %v1133_v1  ;;  %1037 = vmatprep.subr.bf16.mxu1 %v1134_v2  ;;  %v1137_v6 = vld [vmem:[#allocation5 + $0x10] sm:$0xff]   ;;  %v1140_v7 = vld [vmem:[#allocation7 + $0x18] sm:$0xff]   ;;  %v1142_v9 = vld [vmem:[#allocation7 + $0x20] sm:$0xff]   ;;  %vm371_vm4 = vcmask 1044484   ;;  %vm373_vm5 = vcmask 1045509   ;;  %vm375_vm6 = vcmask 1046534  }
  0x6c   : > { %1019 = vmatprep.subr.bf16.mxu0 %v1336_v0  ;;  %1038 = vmatpush3.bf16.msra.mxu1 %v1134_v2  ;;  %v1139_v8 = vld [vmem:[#allocation5 + $0x18] sm:$0xff]   ;;  %v1141_v10 = vld [vmem:[#allocation5 + $0x20] sm:$0xff]   ;;  %v1570_v12 = vld [vmem:[%s1550_s28 + $0x8] sm:$0xff]   ;;  %vm377_vm7 = vcmask 1047559   ;;  %s968_s30 = sshll.u32 %s1546_s8, 3  ;;  %s992_s6 = sshll.u32 %s1386_s19, 7 }
  0x6d   : > { %1039 = vmatprep.subr.bf16.mxu1 %v1136_v4  ;;  %v1567_v11 = vld [vmem:[%s1550_s28] sm:$0xff]   ;;  %v1573_v13 = vld [vmem:[%s1550_s28 + $0x10] sm:$0xff]   ;;  %v1144_v14 = vld [vmem:[#allocation7 + $0x28] sm:$0xff]   ;;  %v1585_v18 = vunpack.c.l.bf16 %v1570_v12  ;;  %v1588_v19 = vunpack.c.h.bf16 %v1570_v12  ;;  %s244_s25 = scalar_lea.vmem [#allocation8], %s968_s30  ;;  %s1657_s29 = scalar_lea.hbm %s1706_s4, %s992_s6 }
  0x6e   : > { %v1576_v15 = vld [vmem:[%s1550_s28 + $0x18] sm:$0xff]   ;;  %v1579_v16 = vunpack.c.l.bf16 %v1567_v11  ;;  %v1582_v17 = vunpack.c.h.bf16 %v1567_v11  ;;  %v1143_v20 = vld [vmem:[#allocation5 + $0x28] sm:$0xff]   ;;  %v1591_v21 = vunpack.c.l.bf16 %v1573_v13  ;;  %v1594_v22 = vunpack.c.h.bf16 %v1573_v13  ;;  %v1146_v33 = vld [vmem:[#allocation7 + $0x30] sm:$0xff]   ;;  %1053 = vmatprep.mubr.bf16.mxu1 %v1567_v11  ;;  %s867_s7 = sshll.u32 %s244_s25, 4  ;;  %s854_s19 = scalar_lea.sflag [#allocation4], %s1546_s8  ;;  %s1659_s7 = int_to_ptr.vmem [resolvable:$true] %s867_s7 }
  0x6f   : > { %1020 = vmatpush3.bf16.msra.mxu0 %v1135_v3  ;;  %v1597_v23 = vunpack.c.l.bf16 %v1576_v15  ;;  %v1600_v24 = vunpack.c.h.bf16 %v1576_v15  ;;  %v277_v27 = vrot.slane %v1585_v18, 4  ;;  %v283_v28 = vrot.slane %v1588_v19, 4  ;;  %v1145_v38 = vld [vmem:[#allocation5 + $0x30] sm:$0xff]   ;;  %v1148_v51 = vld [vmem:[#allocation7 + $0x38] sm:$0xff]   ;;  %s1259_s5 = scalar_lea.vmem %s1659_s7, 128  ;;  %p1720_p0 = scmp.ne.s32.totalorder %s1715_s13, 0 }
  0x70   : > { %1021 = vmatprep.subr.bf16.mxu0 %v1336_v0  ;;  %1040 = vmatpush3.bf16.msra.mxu1 %v1136_v4  ;;  %v265_v25 = vrot.slane %v1579_v16, 4  ;;  %v271_v26 = vrot.slane %v1582_v17, 4  ;;  %v289_v29 = vrot.slane %v1591_v21, 4  ;;  %v295_v30 = vrot.slane %v1594_v22, 4  ;;  %v1147_v56 = vld [vmem:[#allocation5 + $0x38] sm:$0xff]   ;;  %p1260_p11 = scmp.ne.s32.totalorder %s1659_s7, %s1259_s5  ;;  %s1339_s9 = smov [#allocation8]  }
  0x71   : > { %1041 = vmatprep.subr.bf16.mxu1 %v1138_v5  ;;  %v301_v31 = vrot.slane %v1597_v23, 4  ;;  %v307_v32 = vrot.slane %v1600_v24, 4  ;;  %v278_v36 = vadd.f32 %v277_v27, %v1585_v18  ;;  %v284_v37 = vadd.f32 %v283_v28, %v1588_v19  ;;  %s1263_s10 = sshll.u32 %s1339_s9, 4  ;;  %s1264_s10 = int_to_ptr.vmem [resolvable:$false] %s1263_s10 }
  0x72   : > { %v266_v34 = vadd.f32 %v265_v25, %v1579_v16  ;;  %v272_v35 = vadd.f32 %v271_v26, %v1582_v17  ;;  %v290_v39 = vadd.f32 %v289_v29, %v1591_v21  ;;  %v296_v40 = vadd.f32 %v295_v30, %v1594_v22  ;;  %p1261_p2 = pnand %p1260_p11, %p1720_p0  ;;  %s1265_s24 = scalar_lea.vmem %s1264_s10, 256 }
  0x73   : > { %1022 = vmatpush3.bf16.msra.mxu0 %v1137_v6  ;;  %v302_v41 = vadd.f32 %v301_v31, %v1597_v23  ;;  %v308_v42 = vadd.f32 %v307_v32, %v1600_v24  ;;  %v279_v45 = vrot.slane %v278_v36, 2  ;;  %v285_v46 = vrot.slane %v284_v37, 2  ;;  %p1266_p7 = scmp.lt.s32.totalorder %s1659_s7, %s1264_s10  ;;  %p1267_p9 = scmp.lt.s32.totalorder %s1265_s24, %s1259_s5 }
  0x74   : > { %1023 = vmatprep.subr.bf16.mxu0 %v1336_v0  ;;  %1042 = vmatpush3.bf16.msra.mxu1 %v1138_v5  ;;  %v267_v43 = vrot.slane %v266_v34, 2  ;;  %v273_v44 = vrot.slane %v272_v35, 2  ;;  %v291_v47 = vrot.slane %v290_v39, 2  ;;  %v297_v48 = vrot.slane %v296_v40, 2  ;;  %p1262_p3 = pneg %p1261_p2 }
  0x75   : > { %1043 = vmatprep.subr.bf16.mxu1 %v1140_v7  ;;  %v303_v49 = vrot.slane %v302_v41, 2  ;;  %v309_v50 = vrot.slane %v308_v42, 2  ;;  %v280_v54 = vadd.f32 %v279_v45, %v278_v36  ;;  %v286_v55 = vadd.f32 %v285_v46, %v284_v37  ;;  %p1268_p12 = por %p1267_p9, %p1266_p7 }
  0x76   : > { %v268_v52 = vadd.f32 %v267_v43, %v266_v34  ;;  %v274_v53 = vadd.f32 %v273_v44, %v272_v35  ;;  %v292_v57 = vadd.f32 %v291_v47, %v290_v39  ;;  %v298_v58 = vadd.f32 %v297_v48, %v296_v40 }
  0x77   : > { %1024 = vmatpush3.bf16.msra.mxu0 %v1139_v8  ;;  %v304_v59 = vadd.f32 %v303_v49, %v302_v41  ;;  %v310_v60 = vadd.f32 %v309_v50, %v308_v42  ;;  %v281_v63 = vrot.slane %v280_v54, 1  ;;  %v287_v1 = vrot.slane %v286_v55, 1  ;;  %p1269_p1 = pnand %p1268_p12, %p1262_p3 }
  0x78   : > { %1025 = vmatprep.subr.bf16.mxu0 %v1336_v0  ;;  %1044 = vmatpush3.bf16.msra.mxu1 %v1140_v7  ;;  %v269_v61 = vrot.slane %v268_v52, 1  ;;  %v275_v62 = vrot.slane %v274_v53, 1  ;;  %v293_v2 = vrot.slane %v292_v57, 1  ;;  %v299_v3 = vrot.slane %v298_v58, 1 }
  0x79   : > { %1045 = vmatprep.subr.bf16.mxu1 %v1142_v9  ;;  %v305_v4 = vrot.slane %v304_v59, 1  ;;  %v311_v5 = vrot.slane %v310_v60, 1  ;;  %v282_v8 = vadd.f32 %v281_v63, %v280_v54  ;;  %v627_v11 = vlaneseq }
  0x7a   : > { %v270_v6 = vadd.f32 %v269_v61, %v268_v52  ;;  %v276_v7 = vadd.f32 %v275_v62, %v274_v53 }
  0x7b   : > { %1026 = vmatpush3.bf16.msra.mxu0 %v1141_v10  ;;  %v294_v10 = vadd.f32 %v293_v2, %v292_v57  ;;  %v315_v27 = vmul.f32 0.125, %v282_v8  ;;  %v1338_v57 = vmov 1966171168   ;;  %v628_v61 = vshrl.u32 %v627_v11, 7 }
  0x7c   : > { %1027 = vmatprep.subr.bf16.mxu0 %v1336_v0  ;;  %1046 = vmatpush3.bf16.msra.mxu1 %v1142_v9  ;;  %v288_v9 = vadd.f32 %v287_v1, %v286_v55  ;;  %v313_v25 = vmul.f32 0.125, %v270_v6  ;;  %v314_v26 = vmul.f32 0.125, %v276_v7 }
  0x7d   : > { %1047 = vmatprep.subr.bf16.mxu1 %v1144_v14  ;;  %v317_v29 = vmul.f32 0.125, %v294_v10  ;;  %v323_v35 = vpack.c.bf16 %v315_v27, %v315_v27  ;;  %v674_v8 = vsub.s32 0, %v628_v61 }
  0x7e   : > { %v316_v28 = vmul.f32 0.125, %v288_v9  ;;  %v322_v34 = vpack.c.bf16 %v314_v26, %v314_v26 }
  0x7f   : > { %1028 = vmatpush3.bf16.msra.mxu0 %v1143_v20  ;;  %v306_v20 = vadd.f32 %v305_v4, %v304_v59  ;;  %v325_v37 = vpack.c.bf16 %v317_v29, %v317_v29  ;;  %v359_v43 = vunpack.c.l.b16 %v323_v35 }
  0x80   : > { %1029 = vmatprep.subr.bf16.mxu0 %v1336_v0  ;;  %1048 = vmatpush3.bf16.msra.mxu1 %v1144_v14  ;;  %v300_v14 = vadd.f32 %v299_v3, %v298_v58  ;;  %v324_v36 = vpack.c.bf16 %v316_v28, %v316_v28  ;;  %v358_v42 = vunpack.c.l.b16 %v322_v34  ;;  %v625_v58 = vunpack.c.l.s4 %v1338_v57 }
  0x81   : > { %1049 = vmatprep.subr.bf16.mxu1 %v1146_v33  ;;  %v319_v31 = vmul.f32 0.125, %v306_v20  ;;  %v361_v45 = vunpack.c.l.b16 %v325_v37 }
  0x82   : > { %v318_v30 = vmul.f32 0.125, %v300_v14  ;;  %v360_v44 = vunpack.c.l.b16 %v324_v36 }
  0x83   : > { %1030 = vmatpush3.bf16.msra.mxu0 %v1145_v38  ;;  %v327_v39 = vpack.c.bf16 %v319_v31, %v319_v31 }
  0x84   : > { %1031 = vmatprep.subr.bf16.mxu0 %v1336_v0  ;;  %1050 = vmatpush3.bf16.msra.mxu1 %v1146_v33  ;;  %v312_v0 = vadd.f32 %v311_v5, %v310_v60  ;;  %v321_v33 = vpack.c.bf16 %v313_v25, %v313_v25  ;;  %v326_v38 = vpack.c.bf16 %v318_v30, %v318_v30  ;;  %v626_v60 = vunpack.c.0.s8 %v625_v58 }
  0x85   : > { %1051 = vmatprep.subr.bf16.mxu1 %v1148_v51  ;;  %v363_v48 = vunpack.c.l.b16 %v327_v39 }
  0x86   : > { %v320_v32 = vmul.f32 0.125, %v312_v0  ;;  %v357_v41 = vunpack.c.l.b16 %v321_v33  ;;  %v362_v46 = vunpack.c.l.b16 %v326_v38  ;;  %v629_v1 = vsub.s32 %v626_v60, %v628_v61  ;;  %v990_v61 = vld [vmem:[%s1705_s3 + $0x1] ss:$0 sm:$0xff] }
  0x87   : > { %1032 = vmatpush3.bf16.msra.mxu0 %v1147_v56 }
  0x88   : > { %1052 = vmatpush3.bf16.msra.mxu1 %v1148_v51  ;;  %v328_v40 = vpack.c.bf16 %v320_v32, %v320_v32  ;;  %v366_v47 = vsel %vm365_vm1, %v358_v42, %v357_v41 }
  0x89   : > { %v368_v49 = vsel %vm367_vm2, %v359_v43, %v366_v47 }
  0x8a   : > { %v364_v50 = vunpack.c.l.b16 %v328_v40  ;;  %v370_v51 = vsel %vm369_vm3, %v360_v44, %v368_v49 }
  0x8b   : > { %v372_v52 = vsel %vm371_vm4, %v361_v45, %v370_v51  ;;  %1054 = vmatmul.mubr.bf16.vlgmr.msra.gmra.mrb[0].mxu1 %v1570_v12 }
  0x8c   : > { %v374_v53 = vsel %vm373_vm5, %v362_v46, %v372_v52  ;;  %1057 = vmatprep.mubr.bf16.mxu1 %v1573_v13  ;;  %v969_v13 = vld [vmem:[%s1705_s3] ss:$0 sm:$0xff] }
  0x8d   : > { %v376_v54 = vsel %vm375_vm6, %v363_v48, %v374_v53 }
  0x8e   : > { %v378_v55 = vsel %vm377_vm7, %v364_v50, %v376_v54 }
  0x8f   : > { %v379_v56 = vpack.c.b16 %v378_v55, %v378_v55 }
  0x91   : > { %1034 = vmatmul.mubr.bf16.vlgmr.msra.gmra.mrb[0].mxu0 %v379_v56 }
  0x93   : > { %1058 = vmatmul.mubr.bf16.gmra.mrb[4].mxu1 %v1576_v15 }
 0x15e   : > { %v1055_v59 = vpop.f32.mrb[0].mxu1 }
 0x15f   : > { %v591_v62 = vpop.f32.mrb[1].mxu1 }
 0x160   : > { %v1056_v12 = vpop.f32.mrb[2].mxu1 }
 0x161   : > { %v594_v63 = vpop.f32.mrb[3].mxu1 }
 0x164   : > { %v463_v2 = vpop.f32.mrb[0].mxu0 }
 0x165   : > { %v464_v3 = vadd.f32 %v969_v13, %v463_v2  ;;  %v1035_v4 = vpop.f32.mrb[1].mxu0 }
 0x166   : > { %v466_v5 = vpop.f32.mrb[2].mxu0  ;;  %v1059_v6 = vpop.f32.mrb[4].mxu1 }
 0x167   : > { %v623_v15 = vcombine.high %v464_v3, %v464_v3  ;;  %v630_v7 = vrot.slane %v464_v3, %v629_v1  ;;  %v1036_v9 = vpop.f32.mrb[3].mxu0  ;;  %v607_v10 = vpop.f32.mrb[5].mxu1 }
 0x168   : > { %v1060_v14 = vpop.f32.mrb[6].mxu1 }
 0x169   : > { %v637_v20 = vrot.slane %v623_v15, %v629_v1  ;;  %v638_v0 = vcombine.high %v630_v7, %v630_v7  ;;  %v646_v25 = vrot.slane %v630_v7, %v629_v1  ;;  %v610_v26 = vpop.f32.mrb[7].mxu1 }
 0x16b   : > { %v639_v27 = vcombine.high %v637_v20, %v637_v20  ;;  %v668_v28 = vcombine.high %v646_v25, %v646_v25  ;;  %v675_v29 = vrot.slane %v646_v25, %v674_v8  ;;  %v660_v30 = vrot.slane %v638_v0, %v629_v1 }
 0x16c   : > { %v653_v31 = vrot.slane %v637_v20, %v629_v1 }
 0x16d   : > { %v683_v32 = vrot.slane %v668_v28, %v674_v8  ;;  %v712_v33 = vadd.f32 %v675_v29, %v591_v62  ;;  %v670_v34 = vcombine.high %v660_v30, %v660_v30  ;;  %v679_v35 = vrot.slane %v660_v30, %v674_v8 }
 0x16e   : > { %v669_v36 = vcombine.high %v653_v31, %v653_v31  ;;  %v691_v37 = vrot.slane %v653_v31, %v674_v8  ;;  %v667_v38 = vrot.slane %v639_v27, %v629_v1 }
 0x16f   : > { %v714_v39 = vadd.f32 %v1055_v59, %v683_v32  ;;  %v720_v40 = vmul.f32 0.5, %v712_v33  ;;  %v687_v41 = vrot.slane %v670_v34, %v674_v8  ;;  %v713_v42 = vadd.f32 %v679_v35, %v594_v63 }
 0x170   : > { %v699_v43 = vrot.slane %v669_v36, %v674_v8  ;;  %v716_v44 = vadd.f32 %v691_v37, %v607_v10  ;;  %v671_v45 = vcombine.high %v667_v38, %v667_v38  ;;  %v695_v46 = vrot.slane %v667_v38, %v674_v8 }
 0x171   : > { %v722_v47 = vmul.f32 0.5, %v714_v39  ;;  %1157 = vtanh.f32 %v720_v40  ;;  %v715_v48 = vadd.f32 %v1056_v12, %v687_v41  ;;  %v721_v49 = vmul.f32 0.5, %v713_v42 }
 0x172   : > { %v718_v50 = vadd.f32 %v1059_v6, %v699_v43  ;;  %v703_v51 = vrot.slane %v671_v45, %v674_v8  ;;  %v717_v52 = vadd.f32 %v695_v46, %v610_v26  ;;  %v724_v54 = vmul.f32 0.5, %v716_v44 }
 0x173   : > { %1159 = vtanh.f32 %v722_v47  ;;  %v723_v53 = vmul.f32 0.5, %v715_v48 }
 0x174   : > { %1161 = vtanh.f32 %v721_v49  ;;  %v726_v55 = vmul.f32 0.5, %v718_v50  ;;  %v719_v56 = vadd.f32 %v1060_v14, %v703_v51  ;;  %v725_v57 = vmul.f32 0.5, %v717_v52 }
 0x175   : > { %1163 = vtanh.f32 %v723_v53 }
 0x176   : > { %1165 = vtanh.f32 %v726_v55  ;;  %v727_v58 = vmul.f32 0.5, %v719_v56 }
 0x177   : > { %1167 = vtanh.f32 %v724_v54 }
 0x178   : > { %1169 = vtanh.f32 %v727_v58 }
 0x179   : > { %1171 = vtanh.f32 %v725_v57 }
 0x17b   : > { %v1158_v11 = vpop.eup %1157 }
 0x17c   : > { %v736_v59 = vadd.f32 1.0, %v1158_v11 }
 0x17d   : > { %v1160_v60 = vpop.eup %1159 }
 0x17e   : > { %v1162_v62 = vpop.eup %1161  ;;  %v744_v12 = vmul.f32 0.5, %v736_v59  ;;  %v738_v63 = vadd.f32 1.0, %v1160_v60 }
 0x17f   : > { %v1164_v13 = vpop.eup %1163  ;;  %v737_v1 = vadd.f32 1.0, %v1162_v62 }
 0x180   : > { %v1166_v2 = vpop.eup %1165  ;;  %v756_v3 = vmul.f32 %v990_v61, %v744_v12  ;;  %v746_v4 = vmul.f32 0.5, %v738_v63  ;;  %v739_v5 = vadd.f32 1.0, %v1164_v13 }
 0x181   : > { %v1168_v6 = vpop.eup %1167  ;;  %v745_v15 = vmul.f32 0.5, %v737_v1  ;;  %v742_v26 = vadd.f32 1.0, %v1166_v2 }
 0x182   : > { %v1170_v7 = vpop.eup %1169  ;;  %764 = vadd.xlane.f32.xlu0 %v756_v3  ;;  %v758_v8 = vmul.f32 %v990_v61, %v746_v4  ;;  %v747_v9 = vmul.f32 0.5, %v739_v5  ;;  %v740_v10 = vadd.f32 1.0, %v1168_v6 }
 0x183   : > { %v1172_v14 = vpop.eup %1171  ;;  %v757_v20 = vmul.f32 %v990_v61, %v745_v15  ;;  %v743_v29 = vadd.f32 1.0, %v1170_v7  ;;  %v750_v31 = vmul.f32 0.5, %v742_v26 }
 0x184   : > { %768 = vadd.xlane.f32.xlu1 %v758_v8  ;;  %v748_v0 = vmul.f32 0.5, %v740_v10  ;;  %v741_v25 = vadd.f32 1.0, %v1172_v14  ;;  %v759_v27 = vmul.f32 %v990_v61, %v747_v9 }
 0x185   : > { %v751_v33 = vmul.f32 0.5, %v743_v29  ;;  %v762_v34 = vmul.f32 %v990_v61, %v750_v31 }
 0x186   : > { %766 = vadd.xlane.f32.xlu0 %v757_v20  ;;  %v749_v28 = vmul.f32 0.5, %v741_v25  ;;  %v760_v30 = vmul.f32 %v990_v61, %v748_v0 }
 0x187   : > { %v763_v35 = vmul.f32 %v990_v61, %v751_v33 }
 0x188   : > { %770 = vadd.xlane.f32.xlu1 %v759_v27  ;;  %v761_v32 = vmul.f32 %v990_v61, %v749_v28 }
 0x18a   : > { %772 = vadd.xlane.f32.xlu0 %v760_v30 }
 0x18c   : > { %774 = vadd.xlane.f32.xlu1 %v761_v32 }
 0x18e   : > { %776 = vadd.xlane.f32.xlu0 %v762_v34 }
 0x190   : > { %778 = vadd.xlane.f32.xlu1 %v763_v35 }
 0x20f   : > { %v765_v36 = vpop.xlane.xlu0 %764 }
 0x210   : > { %v780_v37 = vmul.f32 %v765_v36, %v1579_v16 }
 0x211   : > { %v769_v38 = vpop.xlane.xlu1 %768 }
 0x212   : > { %v788_v39 = vrot.slane %v780_v37, 4  ;;  %v782_v40 = vmul.f32 %v769_v38, %v1585_v18 }
 0x213   : > { %v767_v41 = vpop.xlane.xlu0 %766 }
 0x214   : > { %v789_v42 = vadd.f32 %v788_v39, %v780_v37  ;;  %v800_v43 = vrot.slane %v782_v40, 4  ;;  %v781_v44 = vmul.f32 %v767_v41, %v1582_v17 }
 0x215   : > { %v771_v45 = vpop.xlane.xlu1 %770 }
 0x216   : > { %v790_v46 = vrot.slane %v789_v42, 2  ;;  %v801_v47 = vadd.f32 %v800_v43, %v782_v40  ;;  %v794_v48 = vrot.slane %v781_v44, 4  ;;  %v783_v49 = vmul.f32 %v771_v45, %v1588_v19 }
 0x217   : > { %v773_v50 = vpop.xlane.xlu0 %772 }
 0x218   : > { %v791_v51 = vadd.f32 %v790_v46, %v789_v42  ;;  %v802_v52 = vrot.slane %v801_v47, 2  ;;  %v795_v53 = vadd.f32 %v794_v48, %v781_v44  ;;  %v806_v16 = vrot.slane %v783_v49, 4 }
 0x219   : > { %v784_v54 = vmul.f32 %v773_v50, %v1591_v21  ;;  %v775_v55 = vpop.xlane.xlu1 %774 }
 0x21a   : > { %v803_v18 = vadd.f32 %v802_v52, %v801_v47  ;;  %v796_v56 = vrot.slane %v795_v53, 2  ;;  %v807_v57 = vadd.f32 %v806_v16, %v783_v49  ;;  %v785_v17 = vmul.f32 %v775_v55, %v1594_v22 }
 0x21b   : > { %v812_v58 = vrot.slane %v784_v54, 4  ;;  %v777_v11 = vpop.xlane.xlu0 %776  ;;  %v792_v59 = vrot.slane %v791_v51, 1 }
 0x21c   : > { %v797_v60 = vadd.f32 %v796_v56, %v795_v53  ;;  %v808_v61 = vrot.slane %v807_v57, 2  ;;  %v804_v62 = vrot.slane %v803_v18, 1  ;;  %v818_v12 = vrot.slane %v785_v17, 4 }
 0x21d   : > { %v813_v19 = vadd.f32 %v812_v58, %v784_v54  ;;  %v786_v63 = vmul.f32 %v777_v11, %v1597_v23  ;;  %v779_v13 = vpop.xlane.xlu1 %778  ;;  %v793_v6 = vadd.f32 %v792_v59, %v791_v51 }
 0x21e   : > { %v798_v1 = vrot.slane %v797_v60, 1  ;;  %v809_v2 = vadd.f32 %v808_v61, %v807_v57  ;;  %v787_v21 = vmul.f32 %v779_v13, %v1600_v24  ;;  %v819_v4 = vadd.f32 %v818_v12, %v785_v17 }
 0x21f   : > { %v814_v3 = vrot.slane %v813_v19, 2  ;;  %v824_v5 = vrot.slane %v786_v63, 4  ;;  %v805_v8 = vadd.f32 %v804_v62, %v803_v18 }
 0x220   : > { %v799_v22 = vadd.f32 %v798_v1, %v797_v60  ;;  %v810_v15 = vrot.slane %v809_v2, 1  ;;  %v830_v7 = vrot.slane %v787_v21, 4  ;;  %v820_v10 = vrot.slane %v819_v4, 2 }
 0x221   : > { %v815_v9 = vadd.f32 %v814_v3, %v813_v19  ;;  %v825_v14 = vadd.f32 %v824_v5, %v786_v63 }
 0x222   : > { %v844_v20 = vsel %vm365_vm1, %v799_v22, %v793_v6  ;;  %v811_v23 = vadd.f32 %v810_v15, %v809_v2  ;;  %v831_v0 = vadd.f32 %v830_v7, %v787_v21  ;;  %v821_v26 = vadd.f32 %v820_v10, %v819_v4 }
 0x223   : > { %v845_v25 = vsel %vm367_vm2, %v805_v8, %v844_v20  ;;  %v816_v24 = vrot.slane %v815_v9, 1  ;;  %v826_v27 = vrot.slane %v825_v14, 2 }
 0x224   : > { %v846_v28 = vsel %vm369_vm3, %v811_v23, %v845_v25  ;;  %v832_v29 = vrot.slane %v831_v0, 2  ;;  %v822_v31 = vrot.slane %v821_v26, 1 }
 0x225   : > { %v817_v30 = vadd.f32 %v816_v24, %v815_v9  ;;  %v827_v32 = vadd.f32 %v826_v27, %v825_v14 }
 0x226   : > { %v833_v33 = vadd.f32 %v832_v29, %v831_v0  ;;  %v823_v35 = vadd.f32 %v822_v31, %v821_v26 }
 0x227   : > { %v847_v34 = vsel %vm371_vm4, %v817_v30, %v846_v28  ;;  %v828_v36 = vrot.slane %v827_v32, 1 }
 0x228   : > { %v834_v37 = vrot.slane %v833_v33, 1  ;;  %v848_v38 = vsel %vm373_vm5, %v823_v35, %v847_v34 }
 0x229   : > { %v829_v39 = vadd.f32 %v828_v36, %v827_v32 }
 0x22a   : > { %v835_v40 = vadd.f32 %v834_v37, %v833_v33 }
 0x22b   : > { %v849_v41 = vsel %vm375_vm6, %v829_v39, %v848_v38 }
 0x22c   : > { %v850_v42 = vsel %vm377_vm7, %v835_v40, %v849_v41 }
 0x22d   : > { %852 = vst [vmem:[%s244_s25] sm:$0xff] %v850_v42 }
 0x22e   : > { %1272 = shalt.err (!%p1269_p1)
}
 0x22f   : > { %s1273_s8 = scalar_lea.hbm %s1657_s29, 128  ;;  %s1277_s23 = scalar_lea.hbm %s1706_s4, 256 }
 0x230   : > { %p1274_p13 = scmp.ne.s32.totalorder %s1657_s29, %s1273_s8  ;;  %p1278_p4 = scmp.lt.u32.totalorder %s1657_s29, %s1706_s4 }
 0x231   : > { %p1279_p5 = scmp.lt.u32.totalorder %s1277_s23, %s1273_s8  ;;  %p1281_p11 = scmp.lt.u32.totalorder %s1273_s8, %s1657_s29 }
 0x232   : > { %p1275_p6 = pnand %p1274_p13, %p1720_p0 }
 0x233   : > { %p1280_p8 = por %p1279_p5, %p1278_p4 }
 0x234   : > { %p1276_p10 = pneg %p1275_p6 }
 0x235   : > { %p1282_p2 = por %p1281_p11, %p1280_p8 }
 0x237   : > { %p1283_p3 = pnand %p1282_p2, %p1276_p10 }
 0x239   : > { %1286 = shalt.err (!%p1283_p3)
}
 0x23a   : > { %1071 = dma.vmem_to_hbm [thread:$0]  (%p1720_p0), %s1659_s7, 128, %s1657_s29, %s854_s19  }
 0x23b PF: > { %s879_s30 = sand.u32 1, %s1317_s15   ;;  %p1721_p7 = scmp.ne.s32.totalorder %s1711_s22, 0 }
 0x23c   : > { %p1722_p9 = scmp.ge.s32.totalorder %s1329_s18, 2  ;;  %s880_s6 = scalar_lea.sflag [#allocation4], %s879_s30 }
 0x23e   : > { %p1085_p12 = pnand %p1722_p9, %p1721_p7 }
 0x240   : > { %1312 = dma.done.wait (!%p1085_p12), %s880_s6, 128  }
 0x241   : > { %1314 = vsyncadd (!%p1085_p12), %s880_s6, 4294967168  ;;  %p18_p1 = scmp.ge.s32.totalorder %s1481_s26, 4   ;;  %s1723_s15 = smov %s1321_s16 }
 0x242   : > { %s1724_s16 = smov %s1325_s17  ;;  %s1725_s17 = smov %s1497_s14 }
 0x243   : > { %s1726_s18 = smov %s1481_s26  ;;  %20 = sbr.rel (!%p18_p1) target bundleno = 6 (0x6), region = 89 }
 0x24a   :  { %885 = vsyncpa [#allocation3], 1 }
 0x24b   :  { %887 = vsyncpa [#allocation3 + $0x1], 1 }
 0x24c   :  { %888 = vsyncpa [#allocation6], 1 }
 0x24d   :  { %889 = vsyncpa [#allocation4], 1 }
 0x24e   :  { %891 = vsyncpa [#allocation4 + $0x1], 1 }

</bundles_post_ra>
